<compile_context>
chip_gen: v7x
topology: tpu7x:2x2x1
jax: 0.10.0
libtpu: 0.0.40
codegen_flags: <defaults>
</compile_context>

<pallas_src>
import jax
import jax.numpy as jnp
from jax.experimental import pallas as pl
from jax.experimental.pallas import tpu as pltpu


def _round_up(n: int, m: int) -> int:
    return ((n + m - 1) // m) * m


def _mlp_kernel(x_ref,
                w1_ref, b1_ref,
                w2_ref, b2_ref,
                w3_ref, b3_ref,
                w4_ref, b4_ref,
                out_ref):
    # Layer 1: Linear(64 -> 128) + ReLU   (input zero-padded 63 -> 64)
    h = jnp.dot(x_ref[...], w1_ref[...], preferred_element_type=jnp.float32)
    h = jnp.maximum(h + b1_ref[...], 0.0)
    # Layer 2: Linear(128 -> 128) + ReLU  (hidden zero-padded 64 -> 128)
    h = jnp.dot(h, w2_ref[...], preferred_element_type=jnp.float32)
    h = jnp.maximum(h + b2_ref[...], 0.0)
    # Layer 3: Linear(128 -> 128) + ReLU  (hidden zero-padded 32 -> 128)
    h = jnp.dot(h, w3_ref[...], preferred_element_type=jnp.float32)
    h = jnp.maximum(h + b3_ref[...], 0.0)
    # Layer 4 (head): Linear(128 -> 128), no activation (classes padded 26 -> 128)
    h = jnp.dot(h, w4_ref[...], preferred_element_type=jnp.float32)
    out_ref[...] = (h + b4_ref[...]).astype(out_ref.dtype)


def sibi_basic_mlp_forward(x, params, *, tile_b=1024):
    """Fused forward pass.

    x:      (B, 63) float32
    params: list of 4 (W, b) pairs with W of shape (in, out) and b of shape (1, out)
    tile_b: batch tile size (rows per grid step); clamped for small batches.
    """
    assert len(params) == 4, "kernel is specialized to the 4-layer SIBIBasicMLP"
    B, in_features = x.shape
    num_classes = params[-1][0].shape[1]

    # --- Host-side zero-padding to hardware-friendly shapes -----------------
    in_pad = _round_up(in_features, 8)                      # 63 -> 64
    out_widths = [w.shape[1] for (w, _) in params]          # [128, 64, 32, 26]
    out_widths_pad = [_round_up(w, 128) for w in out_widths]  # all lane-dense (128)

    padded_params = []
    prev_pad = in_pad
    for (w, b), fo_pad in zip(params, out_widths_pad):
        fi, fo = w.shape
        wp = jnp.zeros((prev_pad, fo_pad), jnp.float32).at[:fi, :fo].set(w)
        bp = jnp.zeros((1, fo_pad), jnp.float32).at[:, :fo].set(b)
        padded_params.append((wp, bp))
        prev_pad = fo_pad
    out_pad = out_widths_pad[-1]

    # --- Batch tiling (pad B so every grid step is a full tile) -------------
    tile_b = max(8, min(tile_b, _round_up(B, 8)))
    b_pad = _round_up(B, tile_b)
    x_p = jnp.zeros((b_pad, in_pad), jnp.float32).at[:B, :in_features].set(x)

    flat_params = []
    for (w, b) in padded_params:
        flat_params.extend([w, b])

    grid = (b_pad // tile_b,)

    # Weights/biases: whole-array blocks with a constant index_map so they are
    # loaded once and stay VMEM-resident across all batch tiles.
    weight_specs = [pl.BlockSpec(arr.shape, lambda i: (0, 0)) for arr in flat_params]

    # Advisory cost estimate for XLA scheduling around the custom call.
    dims = [in_pad] + out_widths_pad
    flops = 2 * b_pad * sum(dims[i] * dims[i + 1] for i in range(len(dims) - 1))
    bytes_accessed = 4 * (x_p.size + b_pad * out_pad
                          + sum(int(a.size) for a in flat_params))
    cost = pl.CostEstimate(flops=flops, transcendentals=0,
                           bytes_accessed=bytes_accessed)

    out_full = pl.pallas_call(
        _mlp_kernel,
        out_shape=jax.ShapeDtypeStruct((b_pad, out_pad), jnp.float32),
        grid=grid,
        in_specs=[pl.BlockSpec((tile_b, in_pad), lambda i: (i, 0))] + weight_specs,
        out_specs=pl.BlockSpec((tile_b, out_pad), lambda i: (i, 0)),
        compiler_params=pltpu.CompilerParams(
            dimension_semantics=("parallel",),       # shard batch tiles on v7x
            vmem_limit_bytes=32 * 1024 * 1024,       # safe within v7x's 64 MiB VMEM
        ),
        cost_estimate=cost,
    )(x_p, *flat_params)

    # Drop batch and class padding.
    return out_full[:B, :num_classes]


def init_params(key, input_size=63, hidden_sizes=(128, 64, 32), num_classes=26):
    """Deterministic parameter init (PyTorch-style uniform fan-in bound)."""
    sizes = [input_size] + list(hidden_sizes) + [num_classes]
    params = []
    for i in range(len(sizes) - 1):
        fan_in, fan_out = sizes[i], sizes[i + 1]
        key, kw, kb = jax.random.split(key, 3)
        bound = 1.0 / (fan_in ** 0.5)
        # Stored as (in, out) so the kernel computes x @ W + b
        w = jax.random.uniform(kw, (fan_in, fan_out), jnp.float32, -bound, bound)
        b = jax.random.uniform(kb, (1, fan_out), jnp.float32, -bound, bound)
        params.append((w, b))
    return params


def reference_forward(x, params):
    h = x
    n = len(params)
    for i, (w, b) in enumerate(params):
        h = h @ w + b
        if i < n - 1:
            h = jnp.maximum(h, 0.0)
    return h


if __name__ == "__main__":
    key = jax.random.PRNGKey(0)
    k_params, k_x = jax.random.split(key)

    INPUT_SIZE = 63      # 21 hand landmarks * 3 coords
    NUM_CLASSES = 26
    HIDDEN = (128, 64, 32)
    BATCH = 8

    params = init_params(k_params, INPUT_SIZE, HIDDEN, NUM_CLASSES)
    x = jax.random.normal(k_x, (BATCH, INPUT_SIZE), jnp.float32)

    out = sibi_basic_mlp_forward(x, params)
    out = jax.block_until_ready(out)

    ref = reference_forward(x, params)
    assert out.shape == (BATCH, NUM_CLASSES), out.shape
    assert jnp.allclose(out, ref, atol=1e-4, rtol=1e-4), "mismatch vs reference"

    print("KERNEL_OK")
</pallas_src>

<mosaic_0001>
module attributes {stable_mosaic.version = 11 : i64} {
  func.func @_mlp_kernel(%arg0: i32, %arg1: memref<8x64xf32, #tpu.memory_space<vmem>>, %arg2: memref<64x128xf32, #tpu.memory_space<vmem>>, %arg3: memref<1x128xf32, #tpu.memory_space<vmem>>, %arg4: memref<128x128xf32, #tpu.memory_space<vmem>>, %arg5: memref<1x128xf32, #tpu.memory_space<vmem>>, %arg6: memref<128x128xf32, #tpu.memory_space<vmem>>, %arg7: memref<1x128xf32, #tpu.memory_space<vmem>>, %arg8: memref<128x128xf32, #tpu.memory_space<vmem>>, %arg9: memref<1x128xf32, #tpu.memory_space<vmem>>, %arg10: memref<8x128xf32, #tpu.memory_space<vmem>>) attributes {dimension_semantics = [#tpu.dimension_semantics<parallel>], iteration_bounds = array<i64: 1>, scalar_prefetch = 0 : i64, scratch_operands = 0 : i64, tpu.core_type = #tpu.core_type<tc>, window_params = [{transform_indices = @transform_0, window_bounds = array<i64: 8, 64>}, {pipeline_mode = #tpu.pipeline_mode<synchronous>, transform_indices = @transform_1, window_bounds = array<i64: 64, 128>}, {pipeline_mode = #tpu.pipeline_mode<synchronous>, transform_indices = @transform_2, window_bounds = array<i64: 1, 128>}, {pipeline_mode = #tpu.pipeline_mode<synchronous>, transform_indices = @transform_3, window_bounds = array<i64: 128, 128>}, {pipeline_mode = #tpu.pipeline_mode<synchronous>, transform_indices = @transform_4, window_bounds = array<i64: 1, 128>}, {pipeline_mode = #tpu.pipeline_mode<synchronous>, transform_indices = @transform_5, window_bounds = array<i64: 128, 128>}, {pipeline_mode = #tpu.pipeline_mode<synchronous>, transform_indices = @transform_6, window_bounds = array<i64: 1, 128>}, {pipeline_mode = #tpu.pipeline_mode<synchronous>, transform_indices = @transform_7, window_bounds = array<i64: 128, 128>}, {pipeline_mode = #tpu.pipeline_mode<synchronous>, transform_indices = @transform_8, window_bounds = array<i64: 1, 128>}, {transform_indices = @transform_9, window_bounds = array<i64: 8, 128>}]} {
    %c0 = arith.constant 0 : index
    %c0_0 = arith.constant 0 : index
    %0 = vector.load %arg1[%c0, %c0_0] : memref<8x64xf32, #tpu.memory_space<vmem>>, vector<8x64xf32>
    %c0_1 = arith.constant 0 : index
    %c0_2 = arith.constant 0 : index
    %1 = vector.load %arg2[%c0_1, %c0_2] : memref<64x128xf32, #tpu.memory_space<vmem>>, vector<64x128xf32>
    %cst = arith.constant dense<0.000000e+00> : vector<8x128xf32>
    %2 = tpu.matmul %0, %1, %cst {dimension_numbers = #tpu.dot_dimension_numbers<[1], [0], [0], [1], [0, 0, 1, 1], [], []>} : vector<8x64xf32>, vector<64x128xf32>, vector<8x128xf32> -> vector<8x128xf32>
    %c0_3 = arith.constant 0 : index
    %c0_4 = arith.constant 0 : index
    %3 = vector.load %arg3[%c0_3, %c0_4] : memref<1x128xf32, #tpu.memory_space<vmem>>, vector<1x128xf32>
    %4 = vector.broadcast %3 : vector<1x128xf32> to vector<8x128xf32>
    %5 = arith.addf %2, %4 : vector<8x128xf32>
    %cst_5 = arith.constant 0.000000e+00 : f32
    %6 = vector.broadcast %cst_5 : f32 to vector<8x128xf32>
    %7 = arith.maximumf %5, %6 : vector<8x128xf32>
    %c0_6 = arith.constant 0 : index
    %c0_7 = arith.constant 0 : index
    %8 = vector.load %arg4[%c0_6, %c0_7] : memref<128x128xf32, #tpu.memory_space<vmem>>, vector<128x128xf32>
    %cst_8 = arith.constant dense<0.000000e+00> : vector<8x128xf32>
    %9 = tpu.matmul %7, %8, %cst_8 {dimension_numbers = #tpu.dot_dimension_numbers<[1], [0], [0], [1], [0, 0, 1, 1], [], []>} : vector<8x128xf32>, vector<128x128xf32>, vector<8x128xf32> -> vector<8x128xf32>
    %c0_9 = arith.constant 0 : index
    %c0_10 = arith.constant 0 : index
    %10 = vector.load %arg5[%c0_9, %c0_10] : memref<1x128xf32, #tpu.memory_space<vmem>>, vector<1x128xf32>
    %11 = vector.broadcast %10 : vector<1x128xf32> to vector<8x128xf32>
    %12 = arith.addf %9, %11 : vector<8x128xf32>
    %cst_11 = arith.constant 0.000000e+00 : f32
    %13 = vector.broadcast %cst_11 : f32 to vector<8x128xf32>
    %14 = arith.maximumf %12, %13 : vector<8x128xf32>
    %c0_12 = arith.constant 0 : index
    %c0_13 = arith.constant 0 : index
    %15 = vector.load %arg6[%c0_12, %c0_13] : memref<128x128xf32, #tpu.memory_space<vmem>>, vector<128x128xf32>
    %cst_14 = arith.constant dense<0.000000e+00> : vector<8x128xf32>
    %16 = tpu.matmul %14, %15, %cst_14 {dimension_numbers = #tpu.dot_dimension_numbers<[1], [0], [0], [1], [0, 0, 1, 1], [], []>} : vector<8x128xf32>, vector<128x128xf32>, vector<8x128xf32> -> vector<8x128xf32>
    %c0_15 = arith.constant 0 : index
    %c0_16 = arith.constant 0 : index
    %17 = vector.load %arg7[%c0_15, %c0_16] : memref<1x128xf32, #tpu.memory_space<vmem>>, vector<1x128xf32>
    %18 = vector.broadcast %17 : vector<1x128xf32> to vector<8x128xf32>
    %19 = arith.addf %16, %18 : vector<8x128xf32>
    %cst_17 = arith.constant 0.000000e+00 : f32
    %20 = vector.broadcast %cst_17 : f32 to vector<8x128xf32>
    %21 = arith.maximumf %19, %20 : vector<8x128xf32>
    %c0_18 = arith.constant 0 : index
    %c0_19 = arith.constant 0 : index
    %22 = vector.load %arg8[%c0_18, %c0_19] : memref<128x128xf32, #tpu.memory_space<vmem>>, vector<128x128xf32>
    %cst_20 = arith.constant dense<0.000000e+00> : vector<8x128xf32>
    %23 = tpu.matmul %21, %22, %cst_20 {dimension_numbers = #tpu.dot_dimension_numbers<[1], [0], [0], [1], [0, 0, 1, 1], [], []>} : vector<8x128xf32>, vector<128x128xf32>, vector<8x128xf32> -> vector<8x128xf32>
    %c0_21 = arith.constant 0 : index
    %c0_22 = arith.constant 0 : index
    %24 = vector.load %arg9[%c0_21, %c0_22] : memref<1x128xf32, #tpu.memory_space<vmem>>, vector<1x128xf32>
    %25 = vector.broadcast %24 : vector<1x128xf32> to vector<8x128xf32>
    %26 = arith.addf %23, %25 : vector<8x128xf32>
    %c0_23 = arith.constant 0 : index
    %c0_24 = arith.constant 0 : index
    %27 = vector.load %arg10[%c0_23, %c0_24] : memref<8x128xf32, #tpu.memory_space<vmem>>, vector<8x128xf32>
    tpu.vector_store %arg10[%c0_23, %c0_24], %26 {strides = array<i32>} : memref<8x128xf32, #tpu.memory_space<vmem>>, vector<8x128xf32>,
    return
  }
  func.func @transform_0(%arg0: i32) -> (i32, i32) {
    %c0_i32 = arith.constant 0 : i32
    %c0_i32_0 = arith.constant 0 : i32
    return %arg0, %c0_i32 : i32, i32
  }
  func.func @transform_1(%arg0: i32) -> (i32, i32) {
    %c0_i32 = arith.constant 0 : i32
    %c0_i32_0 = arith.constant 0 : i32
    %c0_i32_1 = arith.constant 0 : i32
    return %c0_i32, %c0_i32_0 : i32, i32
  }
  func.func @transform_2(%arg0: i32) -> (i32, i32) {
    %c0_i32 = arith.constant 0 : i32
    %c0_i32_0 = arith.constant 0 : i32
    %c0_i32_1 = arith.constant 0 : i32
    return %c0_i32, %c0_i32_0 : i32, i32
  }
  func.func @transform_3(%arg0: i32) -> (i32, i32) {
    %c0_i32 = arith.constant 0 : i32
    %c0_i32_0 = arith.constant 0 : i32
    %c0_i32_1 = arith.constant 0 : i32
    return %c0_i32, %c0_i32_0 : i32, i32
  }
  func.func @transform_4(%arg0: i32) -> (i32, i32) {
    %c0_i32 = arith.constant 0 : i32
    %c0_i32_0 = arith.constant 0 : i32
    %c0_i32_1 = arith.constant 0 : i32
    return %c0_i32, %c0_i32_0 : i32, i32
  }
  func.func @transform_5(%arg0: i32) -> (i32, i32) {
    %c0_i32 = arith.constant 0 : i32
    %c0_i32_0 = arith.constant 0 : i32
    %c0_i32_1 = arith.constant 0 : i32
    return %c0_i32, %c0_i32_0 : i32, i32
  }
  func.func @transform_6(%arg0: i32) -> (i32, i32) {
    %c0_i32 = arith.constant 0 : i32
    %c0_i32_0 = arith.constant 0 : i32
    %c0_i32_1 = arith.constant 0 : i32
    return %c0_i32, %c0_i32_0 : i32, i32
  }
  func.func @transform_7(%arg0: i32) -> (i32, i32) {
    %c0_i32 = arith.constant 0 : i32
    %c0_i32_0 = arith.constant 0 : i32
    %c0_i32_1 = arith.constant 0 : i32
    return %c0_i32, %c0_i32_0 : i32, i32
  }
  func.func @transform_8(%arg0: i32) -> (i32, i32) {
    %c0_i32 = arith.constant 0 : i32
    %c0_i32_0 = arith.constant 0 : i32
    %c0_i32_1 = arith.constant 0 : i32
    return %c0_i32, %c0_i32_0 : i32, i32
  }
  func.func @transform_9(%arg0: i32) -> (i32, i32) {
    %c0_i32 = arith.constant 0 : i32
    %c0_i32_0 = arith.constant 0 : i32
    return %arg0, %c0_i32 : i32, i32
  }
}

</mosaic_0001>

<bundles_post_ra>
// kernel: tpu_custom_call.1
= control target key start
LH: loop header
LB: loop body
LE: loop exit
PB: predicated region body
PF: predicated region fallthrough
CT: control target
= control target key end

     0   :  { %14 = vsyncpa [#allocation3], 0  ;;  %s1106_s0 = inlined_call_operand.hbm [shape: f32[8,64], index: 0, kind: input, shape index: {}]   ;;  %s1107_s1 = inlined_call_operand.hbm [shape: f32[64,128], index: 1, kind: input, shape index: {}]   ;;  %s1108_s2 = inlined_call_operand.vmem [shape: f32[1,128], index: 2, kind: input, shape index: {}]   ;;  %s1109_s3 = inlined_call_operand.hbm [shape: f32[128,128], index: 3, kind: input, shape index: {}]   ;;  %s1110_s4 = inlined_call_operand.vmem [shape: f32[1,128], index: 4, kind: input, shape index: {}]   ;;  %s1111_s5 = inlined_call_operand.hbm [shape: f32[128,128], index: 5, kind: input, shape index: {}]   ;;  %s1112_s6 = inlined_call_operand.vmem [shape: f32[1,128], index: 6, kind: input, shape index: {}]   ;;  %s1113_s7 = inlined_call_operand.hbm [shape: f32[128,128], index: 7, kind: input, shape index: {}]   ;;  %s1114_s8 = inlined_call_operand.vmem [shape: f32[1,128], index: 8, kind: input, shape index: {}]   ;;  %s1115_s9 = inlined_call_operand.hbm [shape: f32[8,128], index: 9, kind: output, shape index: {}]  }
   0x1   :  { %15 = vsyncpa [#allocation6], 0 }
   0x2   :  { %16 = vsyncpa [#allocation9], 0 }
   0x3   :  { %17 = vsyncpa [#allocation4], 0  ;;  %s913_s30 = smov [#allocation5]   ;;  %s773_s13 = scalar_lea.hbm %s1107_s1, 1024 }
   0x4   :  { %s33_s10 = sshll.u32 %s913_s30, 4  ;;  %p774_p0 = scmp.ne.s32.totalorder %s1107_s1, %s773_s13  ;;  %s34_s10 = int_to_ptr.vmem [resolvable:$true] %s33_s10 }
   0x5   :  { %p777_p1 = scmp.lt.u32.totalorder %s773_s13, %s1107_s1 }
   0x7   :  { %p779_p2 = pnand %p777_p1, %p774_p0 }
   0x9   :  { %782 = shalt.err (!%p779_p2)
}
   0xa   :  { %s783_s18 = scalar_lea.vmem %s34_s10, 1024  ;;  %p788_p4 = scmp.lt.s32.totalorder %s34_s10, %s34_s10 }
   0xb   :  { %p784_p3 = scmp.ne.s32.totalorder %s34_s10, %s783_s18  ;;  %p789_p5 = scmp.lt.s32.totalorder %s783_s18, %s783_s18 }
   0xd   :  { %p790_p6 = por %p789_p5, %p788_p4 }
   0xf   :  { %p791_p7 = pnand %p790_p6, %p784_p3 }
  0x11   :  { %794 = shalt.err (!%p791_p7)
}
  0x12   :  { %s914_s19 = smov 128   ;;  %s915_s20 = smov 8  }
  0x13   :  { %39 = dma.hbm_to_vmem [thread:$0]  %s1107_s1, 1024, %s34_s10, [#allocation6], %s914_s19, %s914_s19, %s915_s20  }
  0x14   :  { %s916_s23 = smov [#allocation8]   ;;  %s917_s25 = smov [#allocation2]  }
  0x15   :  { %s61_s24 = sshll.u32 %s916_s23, 4  ;;  %s24_s26 = sshll.u32 %s917_s25, 4  ;;  %s62_s24 = int_to_ptr.vmem [resolvable:$true] %s61_s24  ;;  %s25_s26 = int_to_ptr.vmem [resolvable:$true] %s24_s26 }
  0x16   :  { %s795_s29 = scalar_lea.hbm %s1111_s5, 2048 }
  0x17   :  { %p796_p8 = scmp.ne.s32.totalorder %s1111_s5, %s795_s29  ;;  %p799_p9 = scmp.lt.u32.totalorder %s795_s29, %s1111_s5 }
  0x19   :  { %p801_p10 = pnand %p799_p9, %p796_p8 }
  0x1b   :  { %804 = shalt.err (!%p801_p10)
}
  0x1c   :  { %s805_s1 = scalar_lea.vmem %s62_s24, 2048  ;;  %p810_p12 = scmp.lt.s32.totalorder %s62_s24, %s62_s24 }
  0x1d   :  { %p806_p11 = scmp.ne.s32.totalorder %s62_s24, %s805_s1  ;;  %p811_p13 = scmp.lt.s32.totalorder %s805_s1, %s805_s1 }
  0x1f   :  { %p812_p0 = por %p811_p13, %p810_p12 }
  0x21   :  { %p813_p1 = pnand %p812_p0, %p806_p11 }
  0x23   :  { %816 = shalt.err (!%p813_p1)
}
  0x24   :  { %67 = dma.hbm_to_vmem [thread:$0]  %s1111_s5, 2048, %s62_s24, [#allocation9], %s914_s19, %s914_s19, %s915_s20  }
  0x25   :  { %s817_s17 = scalar_lea.hbm %s1106_s0, 128 }
  0x26   :  { %p818_p2 = scmp.ne.s32.totalorder %s1106_s0, %s817_s17  ;;  %p821_p3 = scmp.lt.u32.totalorder %s817_s17, %s1106_s0 }
  0x28   :  { %p823_p4 = pnand %p821_p3, %p818_p2 }
  0x2a   :  { %826 = shalt.err (!%p823_p4)
}
  0x2b   :  { %s827_s25 = scalar_lea.vmem %s25_s26, 128  ;;  %p832_p6 = scmp.lt.s32.totalorder %s25_s26, %s25_s26 }
  0x2c   :  { %p828_p5 = scmp.ne.s32.totalorder %s25_s26, %s827_s25  ;;  %p833_p7 = scmp.lt.s32.totalorder %s827_s25, %s827_s25 }
  0x2e   :  { %p834_p8 = por %p833_p7, %p832_p6 }
  0x30   :  { %p835_p9 = pnand %p834_p8, %p828_p5 }
  0x32   :  { %838 = shalt.err (!%p835_p9)
}
  0x33   :  { %27 = dma.hbm_to_vmem [thread:$0]  %s1106_s0, 128, %s25_s26, [#allocation3]  }
  0x34   :  { %s918_s27 = smov [#allocation7]   ;;  %s919_s29 = smov [#allocation10]  }
  0x35   :  { %s47_s28 = sshll.u32 %s918_s27, 4  ;;  %s75_s30 = sshll.u32 %s919_s29, 4  ;;  %s48_s28 = int_to_ptr.vmem [resolvable:$true] %s47_s28  ;;  %s76_s30 = int_to_ptr.vmem [resolvable:$true] %s75_s30 }
  0x36   :  { %s839_s13 = scalar_lea.hbm %s1109_s3, 2048 }
  0x37   :  { %p840_p10 = scmp.ne.s32.totalorder %s1109_s3, %s839_s13  ;;  %p843_p11 = scmp.lt.u32.totalorder %s839_s13, %s1109_s3 }
  0x39   :  { %p845_p12 = pnand %p843_p11, %p840_p10 }
  0x3b   :  { %848 = shalt.err (!%p845_p12)
}
  0x3c   :  { %s849_s0 = scalar_lea.vmem %s48_s28, 2048  ;;  %p854_p0 = scmp.lt.s32.totalorder %s48_s28, %s48_s28 }
  0x3d   :  { %p850_p13 = scmp.ne.s32.totalorder %s48_s28, %s849_s0  ;;  %p855_p1 = scmp.lt.s32.totalorder %s849_s0, %s849_s0 }
  0x3f   :  { %p856_p2 = por %p855_p1, %p854_p0 }
  0x41   :  { %p857_p3 = pnand %p856_p2, %p850_p13 }
  0x43   :  { %860 = shalt.err (!%p857_p3)
}
  0x44   :  { %53 = dma.hbm_to_vmem [thread:$0]  %s1109_s3, 2048, %s48_s28, [#allocation6], %s914_s19, %s914_s19, %s915_s20  }
  0x45   :  { %s861_s21 = scalar_lea.hbm %s1113_s7, 2048 }
  0x46   :  { %p862_p4 = scmp.ne.s32.totalorder %s1113_s7, %s861_s21  ;;  %p865_p5 = scmp.lt.u32.totalorder %s861_s21, %s1113_s7 }
  0x48   :  { %p867_p6 = pnand %p865_p5, %p862_p4 }
  0x4a   :  { %870 = shalt.err (!%p867_p6)
}
  0x4b   :  { %s871_s24 = scalar_lea.vmem %s76_s30, 2048  ;;  %p876_p8 = scmp.lt.s32.totalorder %s76_s30, %s76_s30 }
  0x4c   :  { %p872_p7 = scmp.ne.s32.totalorder %s76_s30, %s871_s24  ;;  %p877_p9 = scmp.lt.s32.totalorder %s871_s24, %s871_s24 }
  0x4e   :  { %p878_p10 = por %p877_p9, %p876_p8 }
  0x50   :  { %p879_p11 = pnand %p878_p10, %p872_p7 }
  0x52   :  { %882 = shalt.err (!%p879_p11)
}
  0x53   :  { %81 = dma.hbm_to_vmem [thread:$0]  %s1113_s7, 2048, %s76_s30, [#allocation9], %s914_s19, %s914_s19, %s915_s20  }
  0x54   :  { %905 = dma.done.wait [#allocation3], 128  }
  0x55   :  { %906 = vsyncadd [#allocation3], 4294967168 }
  0x56   :  { %907 = dma.done.wait [#allocation6], 3072  }
  0x57   :  { %908 = vsyncadd [#allocation6], 4294964224 }
  0x58   :  { %909 = dma.done.wait [#allocation9], 4096  }
  0x59   :  { %910 = vsyncadd [#allocation9], 4294963200  ;;  %v920_v0 = vmov 0.0|0.0   ;;  %vm921_vm0 = vmmov 0   ;;  %v922_v1 = vmov 0.0   ;;  %v100_v2 = vld [vmem:[#allocation5] sm:$0xff] }
  0x5a   :  { %678 = vmatprep.subr.bf16.mxu0 %v920_v0  ;;  %570 = vmatprep.mubr.msk.f32.mxu0 %vm921_vm0, %v922_v1  ;;  %v101_v3 = vld [vmem:[#allocation5 + $0x8] sm:$0xff]  ;;  %v102_v4 = vld [vmem:[#allocation5 + $0x10] sm:$0xff]  ;;  %v103_v6 = vld [vmem:[#allocation5 + $0x18] sm:$0xff]  ;;  %vm115_vm1 = vcmask 523264   ;;  %s923_s11 = smov [#allocation11]  }
  0x5b   :  { %690 = vmatprep.subr.bf16.mxu1 %v920_v0  ;;  %605 = vmatprep.mubr.msk.f32.mxu1 %vm921_vm0, %v922_v1  ;;  %v679_v5 = vpack.c.bf16 %v101_v3, %v100_v2  ;;  %v682_v7 = vpack.c.bf16 %v103_v6, %v102_v4  ;;  %v190_v8 = vld [vmem:[#allocation7] sm:$0xff]  ;;  %v191_v9 = vld [vmem:[#allocation7 + $0x8] sm:$0xff]  ;;  %v192_v10 = vld [vmem:[#allocation7 + $0x10] sm:$0xff]  ;;  %s478_s12 = sshll.u32 %s923_s11, 4  ;;  %s479_s12 = int_to_ptr.vmem [resolvable:$true] %s478_s12 }
  0x5c   :  { %v104_v11 = vld [vmem:[#allocation5 + $0x20] sm:$0xff]  ;;  %v105_v12 = vld [vmem:[#allocation5 + $0x28] sm:$0xff]  ;;  %v691_v13 = vpack.c.bf16 %v191_v9, %v190_v8  ;;  %v193_v14 = vld [vmem:[#allocation7 + $0x18] sm:$0xff]  ;;  %s883_s13 = scalar_lea.vmem %s479_s12, 128  ;;  %p888_p13 = scmp.lt.s32.totalorder %s479_s12, %s479_s12 }
  0x5d   :  { %680 = vmatpush3.bf16.msra.mxu0 %v679_v5  ;;  %v694_v15 = vpack.c.bf16 %v193_v14, %v192_v10  ;;  %v685_v16 = vpack.c.bf16 %v105_v12, %v104_v11  ;;  %v194_v17 = vld [vmem:[#allocation7 + $0x20] sm:$0xff]  ;;  %v195_v18 = vld [vmem:[#allocation7 + $0x28] sm:$0xff]  ;;  %v106_v19 = vld [vmem:[#allocation5 + $0x30] sm:$0xff]  ;;  %p884_p12 = scmp.ne.s32.totalorder %s479_s12, %s883_s13  ;;  %p889_p0 = scmp.lt.s32.totalorder %s883_s13, %s883_s13 }
  0x5e   :  { %681 = vmatprep.subr.bf16.mxu0 %v920_v0  ;;  %692 = vmatpush3.bf16.msra.mxu1 %v691_v13  ;;  %v107_v20 = vld [vmem:[#allocation5 + $0x38] sm:$0xff]  ;;  %v697_v21 = vpack.c.bf16 %v195_v18, %v194_v17  ;;  %v196_v23 = vld [vmem:[#allocation7 + $0x30] sm:$0xff]  ;;  %v198_v27 = vld [vmem:[#allocation7 + $0x40] sm:$0xff] }
  0x5f   :  { %693 = vmatprep.subr.bf16.mxu1 %v920_v0  ;;  %v688_v22 = vpack.c.bf16 %v107_v20, %v106_v19  ;;  %v197_v24 = vld [vmem:[#allocation7 + $0x38] sm:$0xff]  ;;  %v199_v28 = vld [vmem:[#allocation7 + $0x48] sm:$0xff]  ;;  %v200_v30 = vld [vmem:[#allocation7 + $0x50] sm:$0xff]  ;;  %p890_p1 = por %p889_p0, %p888_p13 }
  0x60   :  { %v700_v25 = vpack.c.bf16 %v197_v24, %v196_v23  ;;  %v99_v26 = vld [vmem:[#allocation2] sm:$0xff]  ;;  %v703_v29 = vpack.c.bf16 %v199_v28, %v198_v27  ;;  %v202_v33 = vld [vmem:[#allocation7 + $0x60] sm:$0xff]  ;;  %v203_v34 = vld [vmem:[#allocation7 + $0x68] sm:$0xff] }
  0x61   :  { %683 = vmatpush3.bf16.msra.mxu0 %v682_v7  ;;  %v201_v31 = vld [vmem:[#allocation7 + $0x58] sm:$0xff]  ;;  %v709_v35 = vpack.c.bf16 %v203_v34, %v202_v33  ;;  %v204_v36 = vld [vmem:[#allocation7 + $0x70] sm:$0xff]  ;;  %v284_v39 = vld [vmem:[#allocation8] sm:$0xff]  ;;  %p891_p2 = pnand %p890_p1, %p884_p12 }
  0x62   :  { %684 = vmatprep.subr.bf16.mxu0 %v920_v0  ;;  %695 = vmatpush3.bf16.msra.mxu1 %v694_v15  ;;  %v706_v32 = vpack.c.bf16 %v201_v31, %v200_v30  ;;  %v205_v37 = vld [vmem:[#allocation7 + $0x78] sm:$0xff]  ;;  %v285_v40 = vld [vmem:[#allocation8 + $0x8] sm:$0xff]  ;;  %v286_v41 = vld [vmem:[#allocation8 + $0x10] sm:$0xff] }
  0x63   :  { %696 = vmatprep.subr.bf16.mxu1 %v920_v0  ;;  %v712_v38 = vpack.c.bf16 %v205_v37, %v204_v36  ;;  %v715_v42 = vpack.c.bf16 %v285_v40, %v284_v39  ;;  %v287_v43 = vld [vmem:[#allocation8 + $0x18] sm:$0xff]  ;;  %v288_v45 = vld [vmem:[#allocation8 + $0x20] sm:$0xff]  ;;  %v289_v46 = vld [vmem:[#allocation8 + $0x28] sm:$0xff] }
  0x64   :  { %v718_v44 = vpack.c.bf16 %v287_v43, %v286_v41  ;;  %v721_v47 = vpack.c.bf16 %v289_v46, %v288_v45  ;;  %v290_v48 = vld [vmem:[#allocation8 + $0x30] sm:$0xff]  ;;  %v291_v49 = vld [vmem:[#allocation8 + $0x38] sm:$0xff]  ;;  %v292_v51 = vld [vmem:[#allocation8 + $0x40] sm:$0xff] }
  0x65   :  { %686 = vmatpush3.bf16.msra.mxu0 %v685_v16  ;;  %v724_v50 = vpack.c.bf16 %v291_v49, %v290_v48  ;;  %v293_v52 = vld [vmem:[#allocation8 + $0x48] sm:$0xff]  ;;  %v294_v54 = vld [vmem:[#allocation8 + $0x50] sm:$0xff]  ;;  %v295_v55 = vld [vmem:[#allocation8 + $0x58] sm:$0xff] }
  0x66   :  { %687 = vmatprep.subr.bf16.mxu0 %v920_v0  ;;  %698 = vmatpush3.bf16.msra.mxu1 %v697_v21  ;;  %v727_v53 = vpack.c.bf16 %v293_v52, %v292_v51  ;;  %v730_v56 = vpack.c.bf16 %v295_v55, %v294_v54  ;;  %v296_v57 = vld [vmem:[#allocation8 + $0x60] sm:$0xff]  ;;  %v297_v58 = vld [vmem:[#allocation8 + $0x68] sm:$0xff]  ;;  %v489_v60 = vld [vmem:[%s1108_s2] ss:$0 sm:$0xff] }
  0x67   :  { %699 = vmatprep.subr.bf16.mxu1 %v920_v0  ;;  %v733_v59 = vpack.c.bf16 %v297_v58, %v296_v57  ;;  %v298_v3 = vld [vmem:[#allocation8 + $0x70] sm:$0xff]  ;;  %v299_v4 = vld [vmem:[#allocation8 + $0x78] sm:$0xff]  ;;  %v378_v6 = vld [vmem:[#allocation10] sm:$0xff] }
  0x68   :  { %v736_v5 = vpack.c.bf16 %v299_v4, %v298_v3  ;;  %v379_v7 = vld [vmem:[#allocation10 + $0x8] sm:$0xff]  ;;  %v380_v8 = vld [vmem:[#allocation10 + $0x10] sm:$0xff]  ;;  %v381_v10 = vld [vmem:[#allocation10 + $0x18] sm:$0xff] }
  0x69   :  { %689 = vmatpush3.bf16.msra.mxu0 %v688_v22  ;;  %v739_v9 = vpack.c.bf16 %v379_v7, %v378_v6  ;;  %v742_v11 = vpack.c.bf16 %v381_v10, %v380_v8  ;;  %v382_v12 = vld [vmem:[#allocation10 + $0x20] sm:$0xff]  ;;  %v383_v13 = vld [vmem:[#allocation10 + $0x28] sm:$0xff]  ;;  %v385_v15 = vld [vmem:[#allocation10 + $0x38] sm:$0xff] }
  0x6a   :  { %714 = vmatprep.subr.bf16.mxu0 %v920_v0  ;;  %701 = vmatpush3.bf16.msra.mxu1 %v700_v25  ;;  %v745_v14 = vpack.c.bf16 %v383_v13, %v382_v12  ;;  %v386_v17 = vld [vmem:[#allocation10 + $0x40] sm:$0xff]  ;;  %v387_v18 = vld [vmem:[#allocation10 + $0x48] sm:$0xff]  ;;  %v388_v20 = vld [vmem:[#allocation10 + $0x50] sm:$0xff] }
  0x6b   :  { %702 = vmatprep.subr.bf16.mxu1 %v920_v0  ;;  %v751_v19 = vpack.c.bf16 %v387_v18, %v386_v17  ;;  %v389_v21 = vld [vmem:[#allocation10 + $0x58] sm:$0xff]  ;;  %v390_v23 = vld [vmem:[#allocation10 + $0x60] sm:$0xff]  ;;  %v391_v24 = vld [vmem:[#allocation10 + $0x68] sm:$0xff] }
  0x6c   :  { %571 = vmatmul.mubr.msk.f32.vlgmr.msra.gmra.mrb[0].mxu0 %vm115_vm1, %v99_v26  ;;  %v754_v22 = vpack.c.bf16 %v389_v21, %v388_v20  ;;  %v757_v25 = vpack.c.bf16 %v391_v24, %v390_v23  ;;  %v491_v26 = vld [vmem:[%s1110_s4] ss:$0 sm:$0xff]  ;;  %v392_v31 = vld [vmem:[#allocation10 + $0x70] sm:$0xff] }
  0x6d   :  { %640 = vmatprep.mubr.msk.f32.mxu0 %vm921_vm0, %v922_v1  ;;  %716 = vmatpush3.bf16.msra.mxu0 %v715_v42  ;;  %v492_v34 = vld [vmem:[%s1112_s6] ss:$0 sm:$0xff] }
  0x6e   :  { %704 = vmatpush3.bf16.msra.mxu1 %v703_v29  ;;  %717 = vmatprep.subr.bf16.mxu0 %v920_v0 }
  0x6f   :  { %705 = vmatprep.subr.bf16.mxu1 %v920_v0 }
  0x71   :  { %719 = vmatpush3.bf16.msra.mxu0 %v718_v44 }
  0x72   :  { %707 = vmatpush3.bf16.msra.mxu1 %v706_v32  ;;  %720 = vmatprep.subr.bf16.mxu0 %v920_v0  ;;  %v393_v32 = vld [vmem:[#allocation10 + $0x78] sm:$0xff] }
  0x73   :  { %708 = vmatprep.subr.bf16.mxu1 %v920_v0  ;;  %v760_v33 = vpack.c.bf16 %v393_v32, %v392_v31 }
  0x75   :  { %722 = vmatpush3.bf16.msra.mxu0 %v721_v47 }
  0x76   :  { %710 = vmatpush3.bf16.msra.mxu1 %v709_v35  ;;  %723 = vmatprep.subr.bf16.mxu0 %v920_v0 }
  0x77   :  { %711 = vmatprep.subr.bf16.mxu1 %v920_v0 }
  0x79   :  { %725 = vmatpush3.bf16.msra.mxu0 %v724_v50 }
  0x7a   :  { %713 = vmatpush3.bf16.msra.mxu1 %v712_v38  ;;  %726 = vmatprep.subr.bf16.mxu0 %v920_v0  ;;  %v493_v38 = vld [vmem:[%s1114_s8] ss:$0 sm:$0xff] }
  0x7b   :  { %738 = vmatprep.subr.bf16.mxu1 %v920_v0 }
  0x7d   :  { %728 = vmatpush3.bf16.msra.mxu0 %v727_v53 }
  0x7e   :  { %729 = vmatprep.subr.bf16.mxu0 %v920_v0 }
  0x81   :  { %731 = vmatpush3.bf16.msra.mxu0 %v730_v56 }
  0x82   :  { %732 = vmatprep.subr.bf16.mxu0 %v920_v0 }
  0x85   :  { %734 = vmatpush3.bf16.msra.mxu0 %v733_v59 }
  0x86   :  { %735 = vmatprep.subr.bf16.mxu0 %v920_v0 }
  0x89   :  { %737 = vmatpush3.bf16.msra.mxu0 %v736_v5 }
 0x13f   :  { %v185_v61 = vpop.f32.mrb[0].mxu0 }
 0x140   :  { %v186_v62 = vadd.f32 %v489_v60, %v185_v61  ;;  %v572_v63 = vpop.f32.mrb[1].mxu0 }
 0x142   :  { %v189_v2 = vmax.f32 %v186_v62, 0.0 }
 0x144   :  { %606 = vmatmul.mubr.f32.vlgmr.msra.gmra.mrb[0].mxu1 %v189_v2 }
 0x145   :  { %675 = vmatprep.mubr.msk.f32.mxu1 %vm921_vm0, %v922_v1  ;;  %740 = vmatpush3.bf16.msra.mxu1 %v739_v9  ;;  %v384_v1 = vld [vmem:[#allocation10 + $0x30] sm:$0xff] }
 0x146   :  { %741 = vmatprep.subr.bf16.mxu1 %v920_v0  ;;  %v748_v16 = vpack.c.bf16 %v385_v15, %v384_v1 }
 0x149   :  { %743 = vmatpush3.bf16.msra.mxu1 %v742_v11 }
 0x14a   :  { %744 = vmatprep.subr.bf16.mxu1 %v920_v0 }
 0x14d   :  { %746 = vmatpush3.bf16.msra.mxu1 %v745_v14 }
 0x14e   :  { %747 = vmatprep.subr.bf16.mxu1 %v920_v0 }
 0x151   :  { %749 = vmatpush3.bf16.msra.mxu1 %v748_v16 }
 0x152   :  { %750 = vmatprep.subr.bf16.mxu1 %v920_v0 }
 0x155   :  { %752 = vmatpush3.bf16.msra.mxu1 %v751_v19 }
 0x156   :  { %753 = vmatprep.subr.bf16.mxu1 %v920_v0 }
 0x159   :  { %755 = vmatpush3.bf16.msra.mxu1 %v754_v22 }
 0x15a   :  { %756 = vmatprep.subr.bf16.mxu1 %v920_v0 }
 0x15d   :  { %758 = vmatpush3.bf16.msra.mxu1 %v757_v25 }
 0x15e   :  { %759 = vmatprep.subr.bf16.mxu1 %v920_v0 }
 0x161   :  { %761 = vmatpush3.bf16.msra.mxu1 %v760_v33 }
 0x217   :  { %v279_v27 = vpop.f32.mrb[0].mxu1 }
 0x218   :  { %v280_v28 = vadd.f32 %v491_v26, %v279_v27  ;;  %v607_v29 = vpop.f32.mrb[1].mxu1 }
 0x21a   :  { %v283_v30 = vmax.f32 %v280_v28, 0.0 }
 0x21c   :  { %641 = vmatmul.mubr.f32.vlgmr.msra.gmra.mrb[2].mxu0 %v283_v30 }
 0x2ef   :  { %v373_v35 = vpop.f32.mrb[2].mxu0 }
 0x2f0   :  { %v374_v36 = vadd.f32 %v492_v34, %v373_v35  ;;  %v642_v0 = vpop.f32.mrb[3].mxu0 }
 0x2f2   :  { %v377_v37 = vmax.f32 %v374_v36, 0.0 }
 0x2f4   :  { %676 = vmatmul.mubr.f32.vlgmr.msra.gmra.mrb[2].mxu1 %v377_v37 }
 0x3c7   :  { %v467_v39 = vpop.f32.mrb[2].mxu1 }
 0x3c8   :  { %v468_v40 = vadd.f32 %v493_v38, %v467_v39  ;;  %v677_v41 = vpop.f32.mrb[3].mxu1 }
 0x3ca   :  { %471 = vst [vmem:[#allocation11] sm:$0xff] %v468_v40 }
 0x3cb   :  { %894 = shalt.err (!%p891_p2)
}
 0x3cc   :  { %s895_s10 = scalar_lea.hbm %s1115_s9, 128 }
 0x3cd   :  { %p896_p3 = scmp.ne.s32.totalorder %s1115_s9, %s895_s10  ;;  %p899_p4 = scmp.lt.u32.totalorder %s895_s10, %s1115_s9 }
 0x3cf   :  { %p901_p5 = pnand %p899_p4, %p896_p3 }
 0x3d1   :  { %904 = shalt.err (!%p901_p5)
}
 0x3d2   :  { %481 = dma.vmem_to_hbm [thread:$0]  %s479_s12, 128, %s1115_s9, [#allocation4]  }
 0x3d3   :  { %911 = dma.done.wait [#allocation4], 128  }
 0x3d4   :  { %912 = vsyncadd [#allocation4], 4294967168 }
 0x3d5   :  { %485 = vsyncpa [#allocation3], 1 }
 0x3d6   :  { %486 = vsyncpa [#allocation6], 1 }
 0x3d7   :  { %487 = vsyncpa [#allocation9], 1 }
 0x3d8   :  { %488 = vsyncpa [#allocation4], 1 }

</bundles_post_ra>
